<compile_context>
chip_gen: v7x
topology: tpu7x:2x2x1
jax: 0.10.0
libtpu: 0.0.40
codegen_flags: <defaults>
</compile_context>

<pallas_src>
import functools

import jax
import jax.numpy as jnp
from jax import lax
from jax.experimental import pallas as pl
from jax.experimental.pallas import tpu as pltpu


def _round_up(a: int, b: int) -> int:
    return ((a + b - 1) // b) * b


def _sxf_kernel(x_ref, sp_ref, ft_ref, b_ref, o_ref, *, C, WH, normalize, positive):
    # Normalized spatial filters, laid out (WH, O_pad): column o = spatial filter of output o.
    sp = sp_ref[...].astype(jnp.float32)
    sp = jnp.maximum(sp, 0.0)                 # positive() is always applied to `spatial`
    if normalize:
        nrm = jnp.sqrt(jnp.sum(sp * sp, axis=0, keepdims=True))   # (1, O_pad)
        sp = sp / (nrm + 1e-6)

    ft = ft_ref[...].astype(jnp.float32)      # (C, O_pad)
    if positive:
        ft = jnp.maximum(ft, 0.0)

    sp = sp.astype(x_ref.dtype)               # MXU operand dtype follows x (e.g. bf16)

    acc = jnp.zeros(o_ref.shape, jnp.float32)
    for c in range(C):                        # static, unrolled; C is small
        x_c = x_ref[:, c * WH:(c + 1) * WH]   # (tn, WH), lane-aligned static slice
        z = lax.dot_general(
            x_c, sp, (((1,), (0,)), ((), ())),
            preferred_element_type=jnp.float32,
        )                                     # (tn, O_pad) on the MXU
        acc = acc + z * ft[c:c + 1, :]        # scale by per-output feature weight
    o_ref[...] = (acc + b_ref[...]).astype(o_ref.dtype)


def spatial_x_feature_linear(x, spatial, features, bias=None, *,
                             normalize=True, positive=True, tn=128):
    """
    x        : (N, C, W, H)
    spatial  : (outdims, 1, W, H)
    features : (outdims, C, 1, 1)
    bias     : (outdims,) or None
    returns  : (N, outdims)
    """
    N, C, W, H = x.shape
    O = spatial.shape[0]
    WH = W * H
    D = C * WH
    assert spatial.shape == (O, 1, W, H)
    assert features.shape == (O, C, 1, 1)

    # Lane-dense output: pad outdims to a multiple of 128. Pad batch rows to a tile multiple.
    O_pad = _round_up(O, 128)
    tn = min(tn, _round_up(N, 8))
    N_pad = _round_up(N, tn)

    x_flat = x.reshape(N, D)                           # matches torch .view(N, -1)
    if N_pad != N:
        x_flat = jnp.pad(x_flat, ((0, N_pad - N), (0, 0)))

    # Factorized parameters in MXU-friendly layout (contraction dim leading). These are
    # tiny (O*WH, O*C); no full weight is ever written to HBM.
    sp_t = spatial.reshape(O, WH).T                    # (WH, O)
    ft_t = features.reshape(O, C).T                    # (C, O)
    if O_pad != O:
        sp_t = jnp.pad(sp_t, ((0, 0), (0, O_pad - O)))
        ft_t = jnp.pad(ft_t, ((0, 0), (0, O_pad - O)))
    if bias is None:
        b_row = jnp.zeros((1, O_pad), dtype=jnp.float32)
    else:
        b_row = jnp.pad(bias.astype(jnp.float32).reshape(1, O),
                        ((0, 0), (0, O_pad - O)))

    kernel = functools.partial(_sxf_kernel, C=C, WH=WH,
                               normalize=normalize, positive=positive)

    out = pl.pallas_call(
        kernel,
        out_shape=jax.ShapeDtypeStruct((N_pad, O_pad), x.dtype),
        grid_spec=pltpu.PrefetchScalarGridSpec(
            num_scalar_prefetch=0,
            grid=(N_pad // tn,),                            # 1 step at toy size
            in_specs=[
                pl.BlockSpec((tn, D), lambda i: (i, 0)),        # x row tile
                pl.BlockSpec((WH, O_pad), lambda i: (0, 0)),    # spatial (VMEM-resident)
                pl.BlockSpec((C, O_pad), lambda i: (0, 0)),     # features (VMEM-resident)
                pl.BlockSpec((1, O_pad), lambda i: (0, 0)),     # bias (VMEM-resident)
            ],
            out_specs=pl.BlockSpec((tn, O_pad), lambda i: (i, 0)),
        ),
        compiler_params=pltpu.CompilerParams(
            dimension_semantics=("parallel",),               # batch tiles independent (v7x 2 TCs)
        ),
    )(x_flat, sp_t, ft_t, b_row)
    return out[:N, :O]


if __name__ == "__main__":
    # Module config: in_shape = (c, w, h) = (4, 16, 16), outdims = 32, bias=True
    c, w, h = 4, 16, 16
    outdims = 32
    N = 2

    key = jax.random.PRNGKey(0)
    k_x, k_s, k_f, k_b = jax.random.split(key, 4)

    x = jax.random.normal(k_x, (N, c, w, h), dtype=jnp.float32)
    spatial = jax.random.normal(k_s, (outdims, 1, w, h), dtype=jnp.float32)
    features = jax.random.normal(k_f, (outdims, c, 1, 1), dtype=jnp.float32)
    bias = 0.1 * jax.random.normal(k_b, (outdims,), dtype=jnp.float32)

    y = spatial_x_feature_linear(x, spatial, features, bias,
                                 normalize=True, positive=True)
    y = jax.block_until_ready(y)

    # Pure-JAX reference mirroring the PyTorch forward.
    sp_pos = jnp.maximum(spatial, 0.0)
    nrm = jnp.sqrt(jnp.sum(sp_pos ** 2, axis=(2, 3), keepdims=True))
    ns = sp_pos / (nrm + 1e-6)
    ft_pos = jnp.maximum(features, 0.0)
    w_full = (ns * ft_pos).reshape(outdims, -1)          # (outdims, c*w*h)
    y_ref = jnp.dot(x.reshape(N, -1), w_full.T,
                    precision=jax.lax.Precision.HIGHEST) + bias[None, :]

    assert y.shape == (N, outdims)
    assert jnp.allclose(y, y_ref, atol=5e-3, rtol=5e-3), (
        "max abs diff = %g" % float(jnp.max(jnp.abs(y - y_ref))))

    print("KERNEL_OK")
</pallas_src>

<mosaic_0001>
module attributes {stable_mosaic.version = 11 : i64} {
  func.func @_sxf_kernel(%arg0: i32, %arg1: memref<8x1024xf32, #tpu.memory_space<vmem>>, %arg2: memref<256x128xf32, #tpu.memory_space<vmem>>, %arg3: memref<4x128xf32, #tpu.memory_space<vmem>>, %arg4: memref<1x128xf32, #tpu.memory_space<vmem>>, %arg5: memref<8x128xf32, #tpu.memory_space<vmem>>) attributes {dimension_semantics = [#tpu.dimension_semantics<parallel>], iteration_bounds = array<i64: 1>, scalar_prefetch = 0 : i64, scratch_operands = 0 : i64, tpu.core_type = #tpu.core_type<tc>, window_params = [{transform_indices = @transform_0, window_bounds = array<i64: 8, 1024>}, {pipeline_mode = #tpu.pipeline_mode<synchronous>, transform_indices = @transform_1, window_bounds = array<i64: 256, 128>}, {pipeline_mode = #tpu.pipeline_mode<synchronous>, transform_indices = @transform_2, window_bounds = array<i64: 4, 128>}, {pipeline_mode = #tpu.pipeline_mode<synchronous>, transform_indices = @transform_3, window_bounds = array<i64: 1, 128>}, {transform_indices = @transform_4, window_bounds = array<i64: 8, 128>}]} {
    %c0 = arith.constant 0 : index
    %c0_0 = arith.constant 0 : index
    %0 = vector.load %arg2[%c0, %c0_0] : memref<256x128xf32, #tpu.memory_space<vmem>>, vector<256x128xf32>
    %cst = arith.constant 0.000000e+00 : f32
    %1 = vector.broadcast %cst : f32 to vector<256x128xf32>
    %2 = arith.maximumf %0, %1 : vector<256x128xf32>
    %3 = arith.mulf %2, %2 : vector<256x128xf32>
    %cst_1 = arith.constant dense<0.000000e+00> : vector<128xf32>
    %4 = vector.multi_reduction <add>, %3, %cst_1 [0] : vector<256x128xf32> to vector<128xf32>
    %5 = vector.shape_cast %4 : vector<128xf32> to vector<1x128xf32>
    %6 = math.sqrt %5 : vector<1x128xf32>
    %cst_2 = arith.constant 9.99999997E-7 : f32
    %7 = vector.broadcast %cst_2 : f32 to vector<1x128xf32>
    %8 = arith.addf %6, %7 : vector<1x128xf32>
    %9 = vector.broadcast %8 : vector<1x128xf32> to vector<256x128xf32>
    %10 = arith.divf %2, %9 : vector<256x128xf32>
    %c0_3 = arith.constant 0 : index
    %c0_4 = arith.constant 0 : index
    %11 = vector.load %arg3[%c0_3, %c0_4] : memref<4x128xf32, #tpu.memory_space<vmem>>, vector<4x128xf32>
    %cst_5 = arith.constant 0.000000e+00 : f32
    %12 = vector.broadcast %cst_5 : f32 to vector<4x128xf32>
    %13 = arith.maximumf %11, %12 : vector<4x128xf32>
    %cst_6 = arith.constant 0.000000e+00 : f32
    %14 = vector.broadcast %cst_6 : f32 to vector<8x128xf32>
    %c0_7 = arith.constant 0 : index
    %c0_8 = arith.constant 0 : index
    %15 = vector.load %arg1[%c0_7, %c0_8] : memref<8x1024xf32, #tpu.memory_space<vmem>>, vector<8x256xf32>
    %cst_9 = arith.constant dense<0.000000e+00> : vector<8x128xf32>
    %16 = tpu.matmul %15, %10, %cst_9 {dimension_numbers = #tpu.dot_dimension_numbers<[1], [0], [0], [1], [0, 0, 1, 1], [], []>} : vector<8x256xf32>, vector<256x128xf32>, vector<8x128xf32> -> vector<8x128xf32>
    %17 = vector.extract_strided_slice %13 {offsets = [0, 0], sizes = [1, 128], strides = [1, 1]} : vector<4x128xf32> to vector<1x128xf32>
    %18 = vector.broadcast %17 : vector<1x128xf32> to vector<8x128xf32>
    %19 = arith.mulf %16, %18 : vector<8x128xf32>
    %20 = arith.addf %14, %19 : vector<8x128xf32>
    %c0_10 = arith.constant 0 : index
    %c256 = arith.constant 256 : index
    %21 = vector.load %arg1[%c0_10, %c256] : memref<8x1024xf32, #tpu.memory_space<vmem>>, vector<8x256xf32>
    %cst_11 = arith.constant dense<0.000000e+00> : vector<8x128xf32>
    %22 = tpu.matmul %21, %10, %cst_11 {dimension_numbers = #tpu.dot_dimension_numbers<[1], [0], [0], [1], [0, 0, 1, 1], [], []>} : vector<8x256xf32>, vector<256x128xf32>, vector<8x128xf32> -> vector<8x128xf32>
    %23 = vector.extract_strided_slice %13 {offsets = [1, 0], sizes = [1, 128], strides = [1, 1]} : vector<4x128xf32> to vector<1x128xf32>
    %24 = vector.broadcast %23 : vector<1x128xf32> to vector<8x128xf32>
    %25 = arith.mulf %22, %24 : vector<8x128xf32>
    %26 = arith.addf %20, %25 : vector<8x128xf32>
    %c0_12 = arith.constant 0 : index
    %c512 = arith.constant 512 : index
    %27 = vector.load %arg1[%c0_12, %c512] : memref<8x1024xf32, #tpu.memory_space<vmem>>, vector<8x256xf32>
    %cst_13 = arith.constant dense<0.000000e+00> : vector<8x128xf32>
    %28 = tpu.matmul %27, %10, %cst_13 {dimension_numbers = #tpu.dot_dimension_numbers<[1], [0], [0], [1], [0, 0, 1, 1], [], []>} : vector<8x256xf32>, vector<256x128xf32>, vector<8x128xf32> -> vector<8x128xf32>
    %29 = vector.extract_strided_slice %13 {offsets = [2, 0], sizes = [1, 128], strides = [1, 1]} : vector<4x128xf32> to vector<1x128xf32>
    %30 = vector.broadcast %29 : vector<1x128xf32> to vector<8x128xf32>
    %31 = arith.mulf %28, %30 : vector<8x128xf32>
    %32 = arith.addf %26, %31 : vector<8x128xf32>
    %c0_14 = arith.constant 0 : index
    %c768 = arith.constant 768 : index
    %33 = vector.load %arg1[%c0_14, %c768] : memref<8x1024xf32, #tpu.memory_space<vmem>>, vector<8x256xf32>
    %cst_15 = arith.constant dense<0.000000e+00> : vector<8x128xf32>
    %34 = tpu.matmul %33, %10, %cst_15 {dimension_numbers = #tpu.dot_dimension_numbers<[1], [0], [0], [1], [0, 0, 1, 1], [], []>} : vector<8x256xf32>, vector<256x128xf32>, vector<8x128xf32> -> vector<8x128xf32>
    %35 = vector.extract_strided_slice %13 {offsets = [3, 0], sizes = [1, 128], strides = [1, 1]} : vector<4x128xf32> to vector<1x128xf32>
    %36 = vector.broadcast %35 : vector<1x128xf32> to vector<8x128xf32>
    %37 = arith.mulf %34, %36 : vector<8x128xf32>
    %38 = arith.addf %32, %37 : vector<8x128xf32>
    %c0_16 = arith.constant 0 : index
    %c0_17 = arith.constant 0 : index
    %39 = vector.load %arg4[%c0_16, %c0_17] : memref<1x128xf32, #tpu.memory_space<vmem>>, vector<1x128xf32>
    %40 = vector.broadcast %39 : vector<1x128xf32> to vector<8x128xf32>
    %41 = arith.addf %38, %40 : vector<8x128xf32>
    %c0_18 = arith.constant 0 : index
    %c0_19 = arith.constant 0 : index
    %42 = vector.load %arg5[%c0_18, %c0_19] : memref<8x128xf32, #tpu.memory_space<vmem>>, vector<8x128xf32>
    tpu.vector_store %arg5[%c0_18, %c0_19], %41 {strides = array<i32>} : memref<8x128xf32, #tpu.memory_space<vmem>>, vector<8x128xf32>,
    return
  }
  func.func @transform_0(%arg0: i32) -> (i32, i32) {
    %c0_i32 = arith.constant 0 : i32
    %c0_i32_0 = arith.constant 0 : i32
    return %arg0, %c0_i32 : i32, i32
  }
  func.func @transform_1(%arg0: i32) -> (i32, i32) {
    %c0_i32 = arith.constant 0 : i32
    %c0_i32_0 = arith.constant 0 : i32
    %c0_i32_1 = arith.constant 0 : i32
    return %c0_i32, %c0_i32_0 : i32, i32
  }
  func.func @transform_2(%arg0: i32) -> (i32, i32) {
    %c0_i32 = arith.constant 0 : i32
    %c0_i32_0 = arith.constant 0 : i32
    %c0_i32_1 = arith.constant 0 : i32
    return %c0_i32, %c0_i32_0 : i32, i32
  }
  func.func @transform_3(%arg0: i32) -> (i32, i32) {
    %c0_i32 = arith.constant 0 : i32
    %c0_i32_0 = arith.constant 0 : i32
    %c0_i32_1 = arith.constant 0 : i32
    return %c0_i32, %c0_i32_0 : i32, i32
  }
  func.func @transform_4(%arg0: i32) -> (i32, i32) {
    %c0_i32 = arith.constant 0 : i32
    %c0_i32_0 = arith.constant 0 : i32
    return %arg0, %c0_i32 : i32, i32
  }
}

</mosaic_0001>

<bundles_post_ra>
// kernel: tpu_custom_call.1
= control target key start
LH: loop header
LB: loop body
LE: loop exit
PB: predicated region body
PF: predicated region fallthrough
CT: control target
= control target key end

     0   :  { %9 = vsyncpa [#allocation3], 0  ;;  %s1228_s0 = inlined_call_operand.hbm [shape: f32[8,1024], index: 0, kind: input, shape index: {}]   ;;  %s1229_s1 = inlined_call_operand.hbm [shape: f32[256,128], index: 1, kind: input, shape index: {}]   ;;  %s1230_s2 = inlined_call_operand.vmem [shape: f32[4,128], index: 2, kind: input, shape index: {}]   ;;  %s1231_s3 = inlined_call_operand.vmem [shape: f32[1,128], index: 3, kind: input, shape index: {}]   ;;  %s1232_s4 = inlined_call_operand.hbm [shape: f32[8,128], index: 4, kind: output, shape index: {}]  }
   0x1   :  { %10 = vsyncpa [#allocation6], 0 }
   0x2   :  { %11 = vsyncpa [#allocation4], 0  ;;  %s907_s15 = smov [#allocation2]   ;;  %s908_s17 = smov [#allocation5]  }
   0x3   :  { %s18_s16 = sshll.u32 %s907_s15, 4  ;;  %s27_s18 = sshll.u32 %s908_s17, 4  ;;  %s19_s16 = int_to_ptr.vmem [resolvable:$true] %s18_s16  ;;  %s937_s18 = int_to_ptr.vmem [resolvable:$true] %s27_s18 }
   0x4   :  { %s835_s21 = scalar_lea.hbm %s1228_s0, 1024 }
   0x5   :  { %p836_p0 = scmp.ne.s32.totalorder %s1228_s0, %s835_s21  ;;  %p839_p1 = scmp.lt.u32.totalorder %s835_s21, %s1228_s0 }
   0x7   :  { %p841_p2 = pnand %p839_p1, %p836_p0 }
   0x9   :  { %844 = shalt.err (!%p841_p2)
}
   0xa   :  { %s845_s26 = scalar_lea.vmem %s19_s16, 1024  ;;  %p850_p4 = scmp.lt.s32.totalorder %s19_s16, %s19_s16 }
   0xb   :  { %p846_p3 = scmp.ne.s32.totalorder %s19_s16, %s845_s26  ;;  %p851_p5 = scmp.lt.s32.totalorder %s845_s26, %s845_s26 }
   0xd   :  { %p852_p6 = por %p851_p5, %p850_p4 }
   0xf   :  { %p853_p7 = pnand %p852_p6, %p846_p3 }
  0x11   :  { %856 = shalt.err (!%p853_p7)
}
  0x12   :  { %21 = dma.hbm_to_vmem [thread:$0]  %s1228_s0, 1024, %s19_s16, [#allocation3]  }
  0x13   :  { %s857_s5 = scalar_lea.hbm %s1229_s1, 4096 }
  0x14   :  { %p858_p8 = scmp.ne.s32.totalorder %s1229_s1, %s857_s5  ;;  %p861_p9 = scmp.lt.u32.totalorder %s857_s5, %s1229_s1 }
  0x16   :  { %p863_p10 = pnand %p861_p9, %p858_p8 }
  0x18   :  { %866 = shalt.err (!%p863_p10)
}
  0x19   :  { %s867_s10 = scalar_lea.vmem %s937_s18, 4096  ;;  %p872_p12 = scmp.lt.s32.totalorder %s937_s18, %s937_s18 }
  0x1a   :  { %p868_p11 = scmp.ne.s32.totalorder %s937_s18, %s867_s10  ;;  %p873_p13 = scmp.lt.s32.totalorder %s867_s10, %s867_s10 }
  0x1c   :  { %p874_p0 = por %p873_p13, %p872_p12 }
  0x1e   :  { %p875_p1 = pnand %p874_p0, %p868_p11 }
  0x20   :  { %878 = shalt.err (!%p875_p1)
}
  0x21   :  { %s909_s0 = smov 128   ;;  %s910_s11 = smov 8  }
  0x22   :  { %33 = dma.hbm_to_vmem [thread:$0]  %s1229_s1, 4096, %s937_s18, [#allocation6], %s909_s0, %s909_s0, %s910_s11  }
  0x23   :  { %901 = dma.done.wait [#allocation3], 1024  }
  0x24   :  { %902 = vsyncadd [#allocation3], 4294966272 }
  0x25   :  { %903 = dma.done.wait [#allocation6], 4096  }
  0x26   :  { %904 = vsyncadd [#allocation6], 4294963200  ;;  %v44_v0 = vld [vmem:[#allocation5] sm:$0xff]  ;;  %v45_v1 = vld [vmem:[#allocation5 + $0x8] sm:$0xff]  ;;  %s911_s16 = smov [#allocation7]  }
  0x27   :  { %v46_v2 = vld [vmem:[#allocation5 + $0x10] sm:$0xff]  ;;  %v968_v3 = vmax.f32 %v44_v0, 0.0  ;;  %v970_v4 = vmax.f32 %v45_v1, 0.0  ;;  %v47_v5 = vld [vmem:[#allocation5 + $0x18] sm:$0xff]  ;;  %v48_v7 = vld [vmem:[#allocation5 + $0x20] sm:$0xff]  ;;  %s547_s17 = sshll.u32 %s911_s16, 4  ;;  %s548_s17 = int_to_ptr.vmem [resolvable:$true] %s547_s17 }
  0x28   :  { %v972_v6 = vmax.f32 %v46_v2, 0.0  ;;  %v974_v8 = vmax.f32 %v47_v5, 0.0  ;;  %v49_v11 = vld [vmem:[#allocation5 + $0x28] sm:$0xff]  ;;  %v980_v12 = vmax.f32 %v48_v7, 0.0  ;;  %v50_v14 = vld [vmem:[#allocation5 + $0x30] sm:$0xff]  ;;  %v51_v18 = vld [vmem:[#allocation5 + $0x38] sm:$0xff]  ;;  %p884_p3 = scmp.lt.s32.totalorder %s548_s17, %s548_s17 }
  0x29   :  { %v108_v9 = vmul.f32 %v968_v3, %v968_v3  ;;  %v109_v10 = vmul.f32 %v970_v4, %v970_v4  ;;  %v984_v15 = vmax.f32 %v49_v11, 0.0  ;;  %v988_v19 = vmax.f32 %v50_v14, 0.0  ;;  %v52_v22 = vld [vmem:[#allocation5 + $0x40] sm:$0xff]  ;;  %v53_v26 = vld [vmem:[#allocation5 + $0x48] sm:$0xff]  ;;  %v54_v30 = vld [vmem:[#allocation5 + $0x50] sm:$0xff]  ;;  %s879_s18 = scalar_lea.vmem %s548_s17, 128 }
  0x2a   :  { %v110_v13 = vmul.f32 %v972_v6, %v972_v6  ;;  %v111_v16 = vmul.f32 %v974_v8, %v974_v8  ;;  %v112_v20 = vmul.f32 %v980_v12, %v980_v12  ;;  %v992_v23 = vmax.f32 %v51_v18, 0.0  ;;  %v221_v31 = vld [vmem:[#allocation2 + $0x8] sm:$0xff]  ;;  %v299_v32 = vld [vmem:[#allocation2 + $0x18] sm:$0xff]  ;;  %v56_v40 = vld [vmem:[#allocation5 + $0x60] sm:$0xff]  ;;  %p880_p2 = scmp.ne.s32.totalorder %s548_s17, %s879_s18  ;;  %p885_p4 = scmp.lt.s32.totalorder %s879_s18, %s879_s18 }
  0x2b   :  { %v140_v17 = vadd.f32 %v109_v10, %v108_v9  ;;  %v113_v24 = vmul.f32 %v984_v15, %v984_v15  ;;  %v996_v27 = vmax.f32 %v52_v22, 0.0  ;;  %v114_v28 = vmul.f32 %v988_v19, %v988_v19  ;;  %286 = vmatprep.mubr.f32.mxu0 %v221_v31  ;;  %364 = vmatprep.mubr.f32.mxu1 %v299_v32  ;;  %v55_v36 = vld [vmem:[#allocation5 + $0x58] sm:$0xff]  ;;  %v57_v44 = vld [vmem:[#allocation5 + $0x68] sm:$0xff]  ;;  %v58_v48 = vld [vmem:[#allocation5 + $0x70] sm:$0xff] }
  0x2c   :  { %v1000_v33 = vmax.f32 %v53_v26, 0.0  ;;  %v115_v34 = vmul.f32 %v992_v23, %v992_v23  ;;  %v1004_v37 = vmax.f32 %v54_v30, 0.0  ;;  %v1008_v41 = vmax.f32 %v55_v36, 0.0  ;;  %v59_v52 = vld [vmem:[#allocation5 + $0x78] sm:$0xff]  ;;  %v60_v56 = vld [vmem:[#allocation5 + $0x80] sm:$0xff]  ;;  %v61_v60 = vld [vmem:[#allocation5 + $0x88] sm:$0xff]  ;;  %p886_p5 = por %p885_p4, %p884_p3 }
  0x2d   :  { %v141_v21 = vadd.f32 %v140_v17, %v110_v13  ;;  %v116_v38 = vmul.f32 %v996_v27, %v996_v27  ;;  %v1012_v45 = vmax.f32 %v56_v40, 0.0  ;;  %v1016_v49 = vmax.f32 %v57_v44, 0.0  ;;  %v62_v0 = vld [vmem:[#allocation5 + $0x90] sm:$0xff]  ;;  %v63_v7 = vld [vmem:[#allocation5 + $0x98] sm:$0xff]  ;;  %v64_v13 = vld [vmem:[#allocation5 + $0xa0] sm:$0xff] }
  0x2e   :  { %v117_v42 = vmul.f32 %v1000_v33, %v1000_v33  ;;  %v118_v46 = vmul.f32 %v1004_v37, %v1004_v37  ;;  %v119_v50 = vmul.f32 %v1008_v41, %v1008_v41  ;;  %v1020_v53 = vmax.f32 %v58_v48, 0.0  ;;  %v65_v18 = vld [vmem:[#allocation5 + $0xa8] sm:$0xff]  ;;  %v70_v44 = vld [vmem:[#allocation5 + $0xd0] sm:$0xff]  ;;  %p887_p6 = pnand %p886_p5, %p880_p2 }
  0x2f   :  { %v142_v25 = vadd.f32 %v141_v21, %v111_v16  ;;  %v120_v54 = vmul.f32 %v1012_v45, %v1012_v45  ;;  %v1024_v57 = vmax.f32 %v59_v52, 0.0  ;;  %v121_v58 = vmul.f32 %v1016_v49, %v1016_v49 }
  0x30   :  { %v1028_v61 = vmax.f32 %v60_v56, 0.0  ;;  %v122_v62 = vmul.f32 %v1020_v53, %v1020_v53  ;;  %v1032_v1 = vmax.f32 %v61_v60, 0.0  ;;  %v1036_v9 = vmax.f32 %v62_v0, 0.0  ;;  %v73_v60 = vld [vmem:[#allocation5 + $0xe8] sm:$0xff] }
  0x31   :  { %v143_v29 = vadd.f32 %v142_v25, %v112_v20  ;;  %v123_v2 = vmul.f32 %v1024_v57, %v1024_v57  ;;  %v1040_v14 = vmax.f32 %v63_v7, 0.0  ;;  %v1044_v20 = vmax.f32 %v64_v13, 0.0 }
  0x32   :  { %v124_v10 = vmul.f32 %v1028_v61, %v1028_v61  ;;  %v125_v16 = vmul.f32 %v1032_v1, %v1032_v1  ;;  %v126_v21 = vmul.f32 %v1036_v9, %v1036_v9  ;;  %v1048_v25 = vmax.f32 %v65_v18, 0.0 }
  0x33   :  { %v144_v35 = vadd.f32 %v143_v29, %v113_v24  ;;  %v66_v24 = vld [vmem:[#allocation5 + $0xb0] sm:$0xff]  ;;  %v127_v26 = vmul.f32 %v1040_v14, %v1040_v14  ;;  %v67_v29 = vld [vmem:[#allocation5 + $0xb8] sm:$0xff]  ;;  %v128_v31 = vmul.f32 %v1044_v20, %v1044_v20 }
  0x34   :  { %v1052_v30 = vmax.f32 %v66_v24, 0.0  ;;  %v129_v36 = vmul.f32 %v1048_v25, %v1048_v25 }
  0x35   :  { %v145_v39 = vadd.f32 %v144_v35, %v114_v28  ;;  %v1056_v35 = vmax.f32 %v67_v29, 0.0 }
  0x37   :  { %v146_v43 = vadd.f32 %v145_v39, %v115_v34  ;;  %v68_v34 = vld [vmem:[#allocation5 + $0xc0] sm:$0xff]  ;;  %v69_v39 = vld [vmem:[#allocation5 + $0xc8] sm:$0xff] }
  0x38   :  { %v1060_v40 = vmax.f32 %v68_v34, 0.0 }
  0x39   :  { %v147_v47 = vadd.f32 %v146_v43, %v116_v38 }
  0x3a   :  { %v132_v52 = vmul.f32 %v1060_v40, %v1060_v40 }
  0x3b   :  { %v148_v51 = vadd.f32 %v147_v47, %v117_v42  ;;  %v130_v42 = vmul.f32 %v1052_v30, %v1052_v30  ;;  %v131_v47 = vmul.f32 %v1056_v35, %v1056_v35 }
  0x3d   :  { %v149_v55 = vadd.f32 %v148_v51, %v118_v46  ;;  %v1064_v46 = vmax.f32 %v69_v39, 0.0  ;;  %v1068_v51 = vmax.f32 %v70_v44, 0.0 }
  0x3f   :  { %v150_v59 = vadd.f32 %v149_v55, %v119_v50  ;;  %v71_v50 = vld [vmem:[#allocation5 + $0xd8] sm:$0xff]  ;;  %v72_v55 = vld [vmem:[#allocation5 + $0xe0] sm:$0xff] }
  0x40   :  { %v1072_v56 = vmax.f32 %v71_v50, 0.0 }
  0x41   :  { %v151_v63 = vadd.f32 %v150_v59, %v120_v54 }
  0x42   :  { %v135_v7 = vmul.f32 %v1072_v56, %v1072_v56 }
  0x43   :  { %v152_v5 = vadd.f32 %v151_v63, %v121_v58  ;;  %v133_v58 = vmul.f32 %v1064_v46, %v1064_v46  ;;  %v134_v63 = vmul.f32 %v1068_v51, %v1068_v51 }
  0x45   :  { %v153_v11 = vadd.f32 %v152_v5, %v122_v62  ;;  %v1076_v62 = vmax.f32 %v72_v55, 0.0  ;;  %v1080_v5 = vmax.f32 %v73_v60, 0.0 }
  0x47   :  { %v154_v17 = vadd.f32 %v153_v11, %v123_v2  ;;  %v74_v2 = vld [vmem:[#allocation5 + $0xf0] sm:$0xff]  ;;  %v75_v11 = vld [vmem:[#allocation5 + $0xf8] sm:$0xff] }
  0x48   :  { %v1084_v13 = vmax.f32 %v74_v2, 0.0  ;;  %v1088_v18 = vmax.f32 %v75_v11, 0.0 }
  0x49   :  { %v155_v22 = vadd.f32 %v154_v17, %v124_v10 }
  0x4a   :  { %v138_v24 = vmul.f32 %v1084_v13, %v1084_v13 }
  0x4b   :  { %v156_v28 = vadd.f32 %v155_v22, %v125_v16  ;;  %v136_v16 = vmul.f32 %v1076_v62, %v1076_v62 }
  0x4d   :  { %v157_v32 = vadd.f32 %v156_v28, %v126_v21  ;;  %v137_v21 = vmul.f32 %v1080_v5, %v1080_v5  ;;  %v139_v28 = vmul.f32 %v1088_v18, %v1088_v18 }
  0x4f   :  { %v158_v38 = vadd.f32 %v157_v32, %v127_v26 }
  0x51   :  { %v159_v43 = vadd.f32 %v158_v38, %v128_v31 }
  0x53   :  { %v160_v48 = vadd.f32 %v159_v43, %v129_v36 }
  0x55   :  { %v161_v54 = vadd.f32 %v160_v48, %v130_v42 }
  0x57   :  { %v162_v59 = vadd.f32 %v161_v54, %v131_v47 }
  0x59   :  { %v163_v0 = vadd.f32 %v162_v59, %v132_v52 }
  0x5b   :  { %v164_v10 = vadd.f32 %v163_v0, %v133_v58 }
  0x5d   :  { %v165_v17 = vadd.f32 %v164_v10, %v134_v63 }
  0x5f   :  { %v166_v22 = vadd.f32 %v165_v17, %v135_v7 }
  0x61   :  { %v167_v26 = vadd.f32 %v166_v22, %v136_v16 }
  0x63   :  { %v168_v29 = vadd.f32 %v167_v26, %v137_v21 }
  0x65   :  { %v169_v31 = vadd.f32 %v168_v29, %v138_v24 }
  0x67   :  { %v170_v32 = vadd.f32 %v169_v31, %v139_v28 }
  0x69   :  { %v171_v34 = vrot.slane %v170_v32, 4 }
  0x6b   :  { %v172_v36 = vadd.f32 %v171_v34, %v170_v32 }
  0x6d   :  { %v173_v38 = vrot.slane %v172_v36, 2 }
  0x6f   :  { %v174_v39 = vadd.f32 %v173_v38, %v172_v36  ;;  %v376_v36 = vld [vmem:[#allocation2 + $0x20] sm:$0xff]  ;;  %v454_v38 = vld [vmem:[#allocation2 + $0x30] sm:$0xff] }
  0x71   :  { %v175_v42 = vrot.slane %v174_v39, 1 }
  0x73   :  { %v176_v43 = vadd.f32 %v175_v42, %v174_v39  ;;  %v292_v39 = vlaneseq }
  0x75   :  { %831 = vrsqrt.f32 %v176_v43  ;;  %vm179_vm0 = vcmp.eq.f32.partialorder %v176_v43, inf  ;;  %v182_v47 = vand.u32 2147483648, %v176_v43  ;;  %vm181_vm1 = vcmp.eq.f32.partialorder %v176_v43, 0.0 }
  0x76   :  { %v293_v42 = vshrl.u32 %v292_v39, 7 }
  0x7f   :  { %v832_v44 = vpop.eup %831 }
  0x80   :  { %v178_v48 = vmul.f32 %v832_v44, %v176_v43 }
  0x82   :  { %v180_v50 = vsel %vm179_vm0, %v176_v43, %v178_v48  ;;  %v218_v43 = vld [vmem:[%s1230_s2] sm:$0xf]  ;;  %v372_v48 = vsub.s32 1, %v293_v42 }
  0x83   :  { %v183_v52 = vsel %vm181_vm1, %v182_v47, %v180_v50  ;;  %v219_v44 = vmax.f32 %v218_v43, 0.0  ;;  %v294_v47 = vsub.s32 0, %v293_v42 }
  0x84   :  { %v184_v54 = vadd.f32 1e-06, %v183_v52 }
  0x86   :  { %833 = vrcp.f32 %v184_v54  ;;  %v295_v54 = vrot.slane %v219_v44, %v294_v47 }
  0x90   :  { %v1096_v55 = vpop.eup %833 }
  0x91   :  { %v202_v58 = vmul.f32 %v1096_v55, %v1028_v61  ;;  %v203_v59 = vmul.f32 %v1096_v55, %v1032_v1  ;;  %v186_v60 = vmul.f32 %v1096_v55, %v968_v3  ;;  %v187_v63 = vmul.f32 %v1096_v55, %v970_v4 }
  0x92   :  { %v204_v0 = vmul.f32 %v1096_v55, %v1036_v9  ;;  %v205_v2 = vmul.f32 %v1096_v55, %v1040_v14  ;;  %v188_v7 = vmul.f32 %v1096_v55, %v972_v6  ;;  %v189_v61 = vmul.f32 %v1096_v55, %v974_v8 }
  0x93   :  { %v1114_v10 = vpack.c.bf16 %v203_v59, %v202_v58  ;;  %v1116_v1 = vpack.c.bf16 %v187_v63, %v186_v60  ;;  %v206_v3 = vmul.f32 %v1096_v55, %v1044_v20  ;;  %v207_v4 = vmul.f32 %v1096_v55, %v1048_v25 }
  0x94   :  { %v1122_v9 = vpack.c.bf16 %v205_v2, %v204_v0  ;;  %v1128_v6 = vpack.c.bf16 %v189_v61, %v188_v7  ;;  %v190_v8 = vmul.f32 %v1096_v55, %v980_v12  ;;  %v191_v14 = vmul.f32 %v1096_v55, %v984_v15 }
  0x95   :  { %699 = vmatprep.subr.bf16.mxu0 %v1114_v10  ;;  %731 = vmatprep.subr.bf16.mxu1 %v1114_v10  ;;  %v1136_v20 = vpack.c.bf16 %v207_v4, %v206_v3  ;;  %v208_v25 = vmul.f32 %v1096_v55, %v1052_v30  ;;  %v209_v11 = vmul.f32 %v1096_v55, %v1056_v35  ;;  %v450_v61 = vsub.s32 2, %v293_v42 }
  0x96   :  { %701 = vmatpush3.bf16.msra.mxu0 %v1116_v1  ;;  %733 = vmatpush3.bf16.msra.mxu1 %v1116_v1  ;;  %v1144_v12 = vpack.c.bf16 %v191_v14, %v190_v8  ;;  %v192_v15 = vmul.f32 %v1096_v55, %v988_v19  ;;  %v193_v16 = vmul.f32 %v1096_v55, %v992_v23 }
  0x97   :  { %703 = vmatprep.subr.bf16.mxu0 %v1122_v9  ;;  %735 = vmatprep.subr.bf16.mxu1 %v1122_v9  ;;  %v1152_v30 = vpack.c.bf16 %v209_v11, %v208_v25  ;;  %v210_v35 = vmul.f32 %v1096_v55, %v1060_v40  ;;  %v211_v17 = vmul.f32 %v1096_v55, %v1064_v46 }
  0x98   :  { %v1160_v19 = vpack.c.bf16 %v193_v16, %v192_v15  ;;  %v194_v23 = vmul.f32 %v1096_v55, %v996_v27  ;;  %v195_v21 = vmul.f32 %v1096_v55, %v1000_v33  ;;  %v212_v46 = vmul.f32 %v1096_v55, %v1068_v51  ;;  %v557_v15 = vld [vmem:[%s1231_s3] ss:$0 sm:$0xff] }
  0x99   :  { %v714_v40 = vpack.c.bf16 %v211_v17, %v210_v35  ;;  %v213_v22 = vmul.f32 %v1096_v55, %v1072_v56  ;;  %v196_v27 = vmul.f32 %v1096_v55, %v1004_v37  ;;  %v197_v33 = vmul.f32 %v1096_v55, %v1008_v41 }
  0x9a   :  { %705 = vmatpush3.bf16.msra.mxu0 %v1128_v6  ;;  %737 = vmatpush3.bf16.msra.mxu1 %v1128_v6  ;;  %v716_v24 = vpack.c.bf16 %v195_v21, %v194_v23  ;;  %v214_v51 = vmul.f32 %v1096_v55, %v1076_v62  ;;  %v215_v56 = vmul.f32 %v1096_v55, %v1080_v5 }
  0x9b   :  { %707 = vmatprep.subr.bf16.mxu0 %v1136_v20  ;;  %739 = vmatprep.subr.bf16.mxu1 %v1136_v20  ;;  %v718_v26 = vpack.c.bf16 %v213_v22, %v212_v46  ;;  %v720_v28 = vpack.c.bf16 %v197_v33, %v196_v27  ;;  %v198_v29 = vmul.f32 %v1096_v55, %v1012_v45 }
  0x9c   :  { %v199_v37 = vmul.f32 %v1096_v55, %v1016_v49  ;;  %v722_v41 = vpack.c.bf16 %v215_v56, %v214_v51  ;;  %v216_v31 = vmul.f32 %v1096_v55, %v1084_v13  ;;  %v217_v62 = vmul.f32 %v1096_v55, %v1088_v18  ;;  %v220_v13 = vld [vmem:[#allocation2] sm:$0xff]  ;;  %v298_v18 = vld [vmem:[#allocation2 + $0x10] sm:$0xff] }
  0x9d   :  { %v200_v32 = vmul.f32 %v1096_v55, %v1020_v53  ;;  %v201_v45 = vmul.f32 %v1096_v55, %v1024_v57  ;;  %v377_v53 = vld [vmem:[#allocation2 + $0x28] sm:$0xff]  ;;  %v455_v57 = vld [vmem:[#allocation2 + $0x38] sm:$0xff]  ;;  %v373_v55 = vrot.slane %v219_v44, %v372_v48  ;;  %v451_v3 = vrot.slane %v219_v44, %v450_v61 }
  0x9e   :  { %709 = vmatpush3.bf16.msra.mxu0 %v1144_v12  ;;  %741 = vmatpush3.bf16.msra.mxu1 %v1144_v12  ;;  %v724_v5 = vpack.c.bf16 %v199_v37, %v198_v29  ;;  %v726_v49 = vpack.c.bf16 %v217_v62, %v216_v31 }
  0x9f   :  { %711 = vmatprep.subr.bf16.mxu0 %v1152_v30  ;;  %743 = vmatprep.subr.bf16.mxu1 %v1152_v30  ;;  %v728_v34 = vpack.c.bf16 %v201_v45, %v200_v32 }
  0xa2   :  { %713 = vmatpush3.bf16.msra.mxu0 %v1160_v19  ;;  %745 = vmatpush3.bf16.msra.mxu1 %v1160_v19 }
  0xa3   :  { %715 = vmatprep.subr.bf16.mxu0 %v714_v40  ;;  %747 = vmatprep.subr.bf16.mxu1 %v714_v40 }
  0xa6   :  { %717 = vmatpush3.bf16.msra.mxu0 %v716_v24  ;;  %749 = vmatpush3.bf16.msra.mxu1 %v716_v24 }
  0xa7   :  { %719 = vmatprep.subr.bf16.mxu0 %v718_v26  ;;  %751 = vmatprep.subr.bf16.mxu1 %v718_v26 }
  0xaa   :  { %721 = vmatpush3.bf16.msra.mxu0 %v720_v28  ;;  %753 = vmatpush3.bf16.msra.mxu1 %v720_v28 }
  0xab   :  { %723 = vmatprep.subr.bf16.mxu0 %v722_v41  ;;  %755 = vmatprep.subr.bf16.mxu1 %v722_v41 }
  0xae   :  { %725 = vmatpush3.bf16.msra.mxu0 %v724_v5  ;;  %757 = vmatpush3.bf16.msra.mxu1 %v724_v5 }
  0xaf   :  { %727 = vmatprep.subr.bf16.mxu0 %v726_v49  ;;  %759 = vmatprep.subr.bf16.mxu1 %v726_v49 }
  0xb2   :  { %729 = vmatpush3.bf16.msra.mxu0 %v728_v34  ;;  %761 = vmatpush3.bf16.msra.mxu1 %v728_v34 }
  0xb3   :  { %763 = vmatprep.subr.bf16.mxu0 %v1114_v10  ;;  %795 = vmatprep.subr.bf16.mxu1 %v1114_v10  ;;  %v528_v10 = vsub.s32 3, %v293_v42 }
  0xb5   :  { %287 = vmatmul.mubr.f32.vlgmr.msra.gmra.mrb[0].mxu0 %v220_v13  ;;  %365 = vmatmul.mubr.f32.vlgmr.msra.gmra.mrb[0].mxu1 %v298_v18 }
  0xb6   :  { %765 = vmatpush3.bf16.msra.mxu0 %v1116_v1  ;;  %797 = vmatpush3.bf16.msra.mxu1 %v1116_v1 }
  0xb7   :  { %767 = vmatprep.subr.bf16.mxu0 %v1122_v9  ;;  %799 = vmatprep.subr.bf16.mxu1 %v1122_v9  ;;  %v529_v9 = vrot.slane %v219_v44, %v528_v10 }
  0xb8   :  { %442 = vmatprep.mubr.f32.mxu0 %v377_v53  ;;  %520 = vmatprep.mubr.f32.mxu1 %v455_v57 }
  0xba   :  { %769 = vmatpush3.bf16.msra.mxu0 %v1128_v6  ;;  %801 = vmatpush3.bf16.msra.mxu1 %v1128_v6 }
  0xbb   :  { %771 = vmatprep.subr.bf16.mxu0 %v1136_v20  ;;  %803 = vmatprep.subr.bf16.mxu1 %v1136_v20 }
  0xbe   :  { %773 = vmatpush3.bf16.msra.mxu0 %v1144_v12  ;;  %805 = vmatpush3.bf16.msra.mxu1 %v1144_v12 }
  0xbf   :  { %775 = vmatprep.subr.bf16.mxu0 %v1152_v30  ;;  %807 = vmatprep.subr.bf16.mxu1 %v1152_v30 }
  0xc2   :  { %777 = vmatpush3.bf16.msra.mxu0 %v1160_v19  ;;  %809 = vmatpush3.bf16.msra.mxu1 %v1160_v19 }
  0xc3   :  { %779 = vmatprep.subr.bf16.mxu0 %v714_v40  ;;  %811 = vmatprep.subr.bf16.mxu1 %v714_v40 }
  0xc6   :  { %781 = vmatpush3.bf16.msra.mxu0 %v716_v24  ;;  %813 = vmatpush3.bf16.msra.mxu1 %v716_v24 }
  0xc7   :  { %783 = vmatprep.subr.bf16.mxu0 %v718_v26  ;;  %815 = vmatprep.subr.bf16.mxu1 %v718_v26 }
  0xca   :  { %785 = vmatpush3.bf16.msra.mxu0 %v720_v28  ;;  %817 = vmatpush3.bf16.msra.mxu1 %v720_v28 }
  0xcb   :  { %787 = vmatprep.subr.bf16.mxu0 %v722_v41  ;;  %819 = vmatprep.subr.bf16.mxu1 %v722_v41 }
  0xce   :  { %789 = vmatpush3.bf16.msra.mxu0 %v724_v5  ;;  %821 = vmatpush3.bf16.msra.mxu1 %v724_v5 }
  0xcf   :  { %791 = vmatprep.subr.bf16.mxu0 %v726_v49  ;;  %823 = vmatprep.subr.bf16.mxu1 %v726_v49 }
  0xd2   :  { %793 = vmatpush3.bf16.msra.mxu0 %v728_v34  ;;  %825 = vmatpush3.bf16.msra.mxu1 %v728_v34 }
  0xd5   :  { %443 = vmatmul.mubr.f32.vlgmr.msra.gmra.mrb[2].mxu0 %v376_v36  ;;  %521 = vmatmul.mubr.f32.vlgmr.msra.gmra.mrb[2].mxu1 %v454_v38 }
 0x188   :  { %v590_v50 = vpop.f32.mrb[0].mxu0  ;;  %v625_v52 = vpop.f32.mrb[0].mxu1 }
 0x189   :  { %v591_v58 = vpop.f32.mrb[1].mxu0  ;;  %v626_v59 = vpop.f32.mrb[1].mxu1 }
 0x18a   :  { %v592_v60 = vadd.f32 %v591_v58, %v590_v50  ;;  %v627_v63 = vadd.f32 %v626_v59, %v625_v52 }
 0x18c   :  { %v296_v0 = vmul.f32 %v592_v60, %v295_v54  ;;  %v374_v2 = vmul.f32 %v627_v63, %v373_v55 }
 0x18e   :  { %v375_v7 = vadd.f32 %v374_v2, %v296_v0 }
 0x1a8   :  { %v660_v1 = vpop.f32.mrb[2].mxu0  ;;  %v695_v4 = vpop.f32.mrb[2].mxu1 }
 0x1a9   :  { %v661_v6 = vpop.f32.mrb[3].mxu0  ;;  %v696_v8 = vpop.f32.mrb[3].mxu1 }
 0x1aa   :  { %v662_v14 = vadd.f32 %v661_v6, %v660_v1  ;;  %v697_v20 = vadd.f32 %v696_v8, %v695_v4 }
 0x1ac   :  { %v452_v25 = vmul.f32 %v662_v14, %v451_v3  ;;  %v530_v11 = vmul.f32 %v697_v20, %v529_v9 }
 0x1ae   :  { %v453_v12 = vadd.f32 %v452_v25, %v375_v7 }
 0x1b0   :  { %v531_v16 = vadd.f32 %v530_v11, %v453_v12 }
 0x1b2   :  { %v539_v30 = vadd.f32 %v557_v15, %v531_v16 }
 0x1b4   :  { %540 = vst [vmem:[#allocation7] sm:$0xff] %v539_v30 }
 0x1b5   :  { %890 = shalt.err (!%p887_p6)
}
 0x1b6   :  { %s891_s21 = scalar_lea.hbm %s1232_s4, 128 }
 0x1b7   :  { %p892_p7 = scmp.ne.s32.totalorder %s1232_s4, %s891_s21  ;;  %p895_p8 = scmp.lt.u32.totalorder %s891_s21, %s1232_s4 }
 0x1b9   :  { %p897_p9 = pnand %p895_p8, %p892_p7 }
 0x1bb   :  { %900 = shalt.err (!%p897_p9)
}
 0x1bc   :  { %550 = dma.vmem_to_hbm [thread:$0]  %s548_s17, 128, %s1232_s4, [#allocation4]  }
 0x1bd   :  { %905 = dma.done.wait [#allocation4], 128  }
 0x1be   :  { %906 = vsyncadd [#allocation4], 4294967168 }
 0x1bf   :  { %554 = vsyncpa [#allocation3], 1 }
 0x1c0   :  { %555 = vsyncpa [#allocation6], 1 }
 0x1c1   :  { %556 = vsyncpa [#allocation4], 1 }

</bundles_post_ra>
